<compile_context>
chip_gen: v7x
topology: tpu7x:2x2x1
jax: 0.10.0
libtpu: 0.0.40
codegen_flags: <defaults>
</compile_context>

<pallas_src>
import jax
import jax.numpy as jnp
from jax.experimental import pallas as pl
from jax.experimental.pallas import tpu as pltpu


def _adaptive_encoder_kernel(fm_ref, fl_ref, wma_ref, wmb_ref, wla_ref, wlb_ref,
                             bm_ref, bl_ref, mean_ref, logvar_ref):
    # cat(fm, fl) @ W  ==  fm @ W[:D] + fl @ W[D:]   (no in-kernel concat)
    fm = fm_ref[...]
    fl = fl_ref[...]

    mean = jnp.dot(fm, wma_ref[...], preferred_element_type=jnp.float32)
    mean = mean + jnp.dot(fl, wmb_ref[...], preferred_element_type=jnp.float32)
    mean_ref[...] = (mean + bm_ref[...]).astype(mean_ref.dtype)

    logvar = jnp.dot(fm, wla_ref[...], preferred_element_type=jnp.float32)
    logvar = logvar + jnp.dot(fl, wlb_ref[...], preferred_element_type=jnp.float32)
    logvar_ref[...] = (logvar + bl_ref[...]).astype(logvar_ref.dtype)


def _round_up(x, m):
    return (x + m - 1) // m * m


def adaptive_encoder(final_mean, final_logvar, params, *, block_b=4096,
                     use_pallas=None, out_dtype=jnp.float32):
    """Forward pass.

    final_mean, final_logvar: [B, D] each (D = input_dim // 2).
    params: dict with wm [2D, E], bm [1, E], wl [2D, E], bl [1, E]
            (PyTorch Linear weights stored transposed as [in, out]).
    Returns (mean, logvar), each [B, E] in out_dtype (f32 default; bf16 halves
    writeback bytes if the consumer tolerates it).
    """
    B, D = final_mean.shape
    E = params["wm"].shape[1]

    if use_pallas is None:
        use_pallas = B >= 2048

    if not use_pallas:
        # Tiny-batch fast path: let XLA fuse the bias add; avoids Pallas
        # launch / per-step overhead for a few-hundred-KB problem.
        h = jnp.concatenate([final_mean, final_logvar], axis=-1)
        mean = (h @ params["wm"] + params["bm"]).astype(out_dtype)
        logvar = (h @ params["wl"] + params["bl"]).astype(out_dtype)
        return mean, logvar

    # Split each head's weight by input half once (tiny, VMEM-resident blocks).
    wma, wmb = params["wm"][:D, :], params["wm"][D:, :]   # mean head
    wla, wlb = params["wl"][:D, :], params["wl"][D:, :]   # logvar head
    bm, bl = params["bm"], params["bl"]

    # Batch tile: >= 2 grid steps whenever B > 8 (v7x megacore split), multiple
    # of 8 sublanes, capped at block_b.  Ragged last block via cdiv grid.
    tb = min(block_b, max(8, _round_up(pl.cdiv(B, 2), 8)))
    grid = (pl.cdiv(B, tb),)

    # Lane-padded VMEM footprint estimate: (2 in + 2 out) x 2 bufs x tb x 512 B.
    vmem_limit = (64 << 20) if tb > 2048 else None

    mean, logvar = pl.pallas_call(
        _adaptive_encoder_kernel,
        out_shape=(jax.ShapeDtypeStruct((B, E), out_dtype),
                   jax.ShapeDtypeStruct((B, E), out_dtype)),
        grid_spec=pltpu.PrefetchScalarGridSpec(
            num_scalar_prefetch=0,
            grid=grid,
            in_specs=[
                pl.BlockSpec((tb, D), lambda i: (i, 0)),   # final_mean tile
                pl.BlockSpec((tb, D), lambda i: (i, 0)),   # final_logvar tile
                pl.BlockSpec((D, E), lambda i: (0, 0)),    # Wm (top half)
                pl.BlockSpec((D, E), lambda i: (0, 0)),    # Wm (bottom half)
                pl.BlockSpec((D, E), lambda i: (0, 0)),    # Wl (top half)
                pl.BlockSpec((D, E), lambda i: (0, 0)),    # Wl (bottom half)
                pl.BlockSpec((1, E), lambda i: (0, 0)),    # bm
                pl.BlockSpec((1, E), lambda i: (0, 0)),    # bl
            ],
            out_specs=(
                pl.BlockSpec((tb, E), lambda i: (i, 0)),   # mean
                pl.BlockSpec((tb, E), lambda i: (i, 0)),   # logvar
            ),
        ),
        compiler_params=pltpu.CompilerParams(
            dimension_semantics=("parallel",),             # v7x: 2 TCs split batch
            vmem_limit_bytes=vmem_limit),
    )(final_mean, final_logvar, wma, wmb, wla, wlb, bm, bl)

    return mean, logvar


def init_params(key, task_embedding_size=10, input_dim=20):
    """Deterministic synthetic parameters (PyTorch Linear init, stored [in, out])."""
    ks = jax.random.split(key, 4)
    bound = 1.0 / jnp.sqrt(float(input_dim))

    def linear(kw, kb):
        w = jax.random.uniform(kw, (input_dim, task_embedding_size), jnp.float32,
                               -bound, bound)
        b = jax.random.uniform(kb, (1, task_embedding_size), jnp.float32,
                               -bound, bound)
        return w, b

    wm, bm = linear(ks[0], ks[1])
    wl, bl = linear(ks[2], ks[3])
    return dict(wm=wm, bm=bm, wl=wl, bl=bl)


def _reference(final_mean, final_logvar, params):
    h = jnp.concatenate([final_mean, final_logvar], axis=-1)
    mean = h @ params["wm"] + params["bm"]
    logvar = h @ params["wl"] + params["bl"]
    return mean, logvar


if __name__ == "__main__":
    key = jax.random.PRNGKey(0)
    k_params, k_m, k_l, k_m2, k_l2 = jax.random.split(key, 5)

    task_embedding_size = 10
    input_dim = 20                      # cat of two [B, 10] inputs
    D = input_dim // 2

    params = init_params(k_params, task_embedding_size=task_embedding_size,
                         input_dim=input_dim)

    # --- small-batch check (Pallas path forced so the kernel is exercised) ---
    B = 8
    final_mean = jax.random.normal(k_m, (B, D), jnp.float32)
    final_logvar = jax.random.normal(k_l, (B, D), jnp.float32)

    mean, logvar = adaptive_encoder(final_mean, final_logvar, params,
                                    use_pallas=True)
    jax.block_until_ready((mean, logvar))

    ref_mean, ref_logvar = _reference(final_mean, final_logvar, params)
    assert mean.shape == (B, task_embedding_size)
    assert logvar.shape == (B, task_embedding_size)
    assert jnp.allclose(mean, ref_mean, atol=1e-5, rtol=1e-5)
    assert jnp.allclose(logvar, ref_logvar, atol=1e-5, rtol=1e-5)

    # --- larger, non-divisible batch: multi-step grid + ragged last block ---
    B2 = 4100
    fm2 = jax.random.normal(k_m2, (B2, D), jnp.float32)
    fl2 = jax.random.normal(k_l2, (B2, D), jnp.float32)
    mean2, logvar2 = adaptive_encoder(fm2, fl2, params, use_pallas=True)
    jax.block_until_ready((mean2, logvar2))
    ref_mean2, ref_logvar2 = _reference(fm2, fl2, params)
    assert jnp.allclose(mean2, ref_mean2, atol=1e-5, rtol=1e-5)
    assert jnp.allclose(logvar2, ref_logvar2, atol=1e-5, rtol=1e-5)

    # --- small-B XLA fast path (auto dispatch) still matches the reference ---
    mean3, logvar3 = adaptive_encoder(final_mean, final_logvar, params)
    jax.block_until_ready((mean3, logvar3))
    assert jnp.allclose(mean3, ref_mean, atol=1e-5, rtol=1e-5)
    assert jnp.allclose(logvar3, ref_logvar, atol=1e-5, rtol=1e-5)

    print("KERNEL_OK")
</pallas_src>

<mosaic_0001>
module attributes {stable_mosaic.version = 11 : i64} {
  func.func @_adaptive_encoder_kernel(%arg0: i32, %arg1: memref<8x10xf32, #tpu.memory_space<vmem>>, %arg2: memref<8x10xf32, #tpu.memory_space<vmem>>, %arg3: memref<10x10xf32, #tpu.memory_space<vmem>>, %arg4: memref<10x10xf32, #tpu.memory_space<vmem>>, %arg5: memref<10x10xf32, #tpu.memory_space<vmem>>, %arg6: memref<10x10xf32, #tpu.memory_space<vmem>>, %arg7: memref<1x10xf32, #tpu.memory_space<vmem>>, %arg8: memref<1x10xf32, #tpu.memory_space<vmem>>, %arg9: memref<8x10xf32, #tpu.memory_space<vmem>>, %arg10: memref<8x10xf32, #tpu.memory_space<vmem>>) attributes {dimension_semantics = [#tpu.dimension_semantics<parallel>], iteration_bounds = array<i64: 1>, scalar_prefetch = 0 : i64, scratch_operands = 0 : i64, tpu.core_type = #tpu.core_type<tc>, window_params = [{transform_indices = @transform_0, window_bounds = array<i64: 8, 10>}, {transform_indices = @transform_1, window_bounds = array<i64: 8, 10>}, {pipeline_mode = #tpu.pipeline_mode<synchronous>, transform_indices = @transform_2, window_bounds = array<i64: 10, 10>}, {pipeline_mode = #tpu.pipeline_mode<synchronous>, transform_indices = @transform_3, window_bounds = array<i64: 10, 10>}, {pipeline_mode = #tpu.pipeline_mode<synchronous>, transform_indices = @transform_4, window_bounds = array<i64: 10, 10>}, {pipeline_mode = #tpu.pipeline_mode<synchronous>, transform_indices = @transform_5, window_bounds = array<i64: 10, 10>}, {pipeline_mode = #tpu.pipeline_mode<synchronous>, transform_indices = @transform_6, window_bounds = array<i64: 1, 10>}, {pipeline_mode = #tpu.pipeline_mode<synchronous>, transform_indices = @transform_7, window_bounds = array<i64: 1, 10>}, {transform_indices = @transform_8, window_bounds = array<i64: 8, 10>}, {transform_indices = @transform_9, window_bounds = array<i64: 8, 10>}]} {
    %c0 = arith.constant 0 : index
    %c0_0 = arith.constant 0 : index
    %0 = vector.load %arg1[%c0, %c0_0] : memref<8x10xf32, #tpu.memory_space<vmem>>, vector<8x10xf32>
    %c0_1 = arith.constant 0 : index
    %c0_2 = arith.constant 0 : index
    %1 = vector.load %arg2[%c0_1, %c0_2] : memref<8x10xf32, #tpu.memory_space<vmem>>, vector<8x10xf32>
    %c0_3 = arith.constant 0 : index
    %c0_4 = arith.constant 0 : index
    %2 = vector.load %arg3[%c0_3, %c0_4] : memref<10x10xf32, #tpu.memory_space<vmem>>, vector<10x10xf32>
    %cst = arith.constant dense<0.000000e+00> : vector<8x10xf32>
    %3 = tpu.matmul %0, %2, %cst {dimension_numbers = #tpu.dot_dimension_numbers<[1], [0], [0], [1], [0, 0, 1, 1], [], []>} : vector<8x10xf32>, vector<10x10xf32>, vector<8x10xf32> -> vector<8x10xf32>
    %c0_5 = arith.constant 0 : index
    %c0_6 = arith.constant 0 : index
    %4 = vector.load %arg4[%c0_5, %c0_6] : memref<10x10xf32, #tpu.memory_space<vmem>>, vector<10x10xf32>
    %cst_7 = arith.constant dense<0.000000e+00> : vector<8x10xf32>
    %5 = tpu.matmul %1, %4, %cst_7 {dimension_numbers = #tpu.dot_dimension_numbers<[1], [0], [0], [1], [0, 0, 1, 1], [], []>} : vector<8x10xf32>, vector<10x10xf32>, vector<8x10xf32> -> vector<8x10xf32>
    %6 = arith.addf %3, %5 : vector<8x10xf32>
    %c0_8 = arith.constant 0 : index
    %c0_9 = arith.constant 0 : index
    %7 = vector.load %arg7[%c0_8, %c0_9] : memref<1x10xf32, #tpu.memory_space<vmem>>, vector<1x10xf32>
    %8 = vector.broadcast %7 : vector<1x10xf32> to vector<8x10xf32>
    %9 = arith.addf %6, %8 : vector<8x10xf32>
    %c0_10 = arith.constant 0 : index
    %c0_11 = arith.constant 0 : index
    %10 = vector.load %arg9[%c0_10, %c0_11] : memref<8x10xf32, #tpu.memory_space<vmem>>, vector<8x10xf32>
    tpu.vector_store %arg9[%c0_10, %c0_11], %9 {strides = array<i32>} : memref<8x10xf32, #tpu.memory_space<vmem>>, vector<8x10xf32>,
    %c0_12 = arith.constant 0 : index
    %c0_13 = arith.constant 0 : index
    %11 = vector.load %arg5[%c0_12, %c0_13] : memref<10x10xf32, #tpu.memory_space<vmem>>, vector<10x10xf32>
    %cst_14 = arith.constant dense<0.000000e+00> : vector<8x10xf32>
    %12 = tpu.matmul %0, %11, %cst_14 {dimension_numbers = #tpu.dot_dimension_numbers<[1], [0], [0], [1], [0, 0, 1, 1], [], []>} : vector<8x10xf32>, vector<10x10xf32>, vector<8x10xf32> -> vector<8x10xf32>
    %c0_15 = arith.constant 0 : index
    %c0_16 = arith.constant 0 : index
    %13 = vector.load %arg6[%c0_15, %c0_16] : memref<10x10xf32, #tpu.memory_space<vmem>>, vector<10x10xf32>
    %cst_17 = arith.constant dense<0.000000e+00> : vector<8x10xf32>
    %14 = tpu.matmul %1, %13, %cst_17 {dimension_numbers = #tpu.dot_dimension_numbers<[1], [0], [0], [1], [0, 0, 1, 1], [], []>} : vector<8x10xf32>, vector<10x10xf32>, vector<8x10xf32> -> vector<8x10xf32>
    %15 = arith.addf %12, %14 : vector<8x10xf32>
    %c0_18 = arith.constant 0 : index
    %c0_19 = arith.constant 0 : index
    %16 = vector.load %arg8[%c0_18, %c0_19] : memref<1x10xf32, #tpu.memory_space<vmem>>, vector<1x10xf32>
    %17 = vector.broadcast %16 : vector<1x10xf32> to vector<8x10xf32>
    %18 = arith.addf %15, %17 : vector<8x10xf32>
    %c0_20 = arith.constant 0 : index
    %c0_21 = arith.constant 0 : index
    %19 = vector.load %arg10[%c0_20, %c0_21] : memref<8x10xf32, #tpu.memory_space<vmem>>, vector<8x10xf32>
    tpu.vector_store %arg10[%c0_20, %c0_21], %18 {strides = array<i32>} : memref<8x10xf32, #tpu.memory_space<vmem>>, vector<8x10xf32>,
    return
  }
  func.func @transform_0(%arg0: i32) -> (i32, i32) {
    %c0_i32 = arith.constant 0 : i32
    %c0_i32_0 = arith.constant 0 : i32
    return %arg0, %c0_i32 : i32, i32
  }
  func.func @transform_1(%arg0: i32) -> (i32, i32) {
    %c0_i32 = arith.constant 0 : i32
    %c0_i32_0 = arith.constant 0 : i32
    return %arg0, %c0_i32 : i32, i32
  }
  func.func @transform_2(%arg0: i32) -> (i32, i32) {
    %c0_i32 = arith.constant 0 : i32
    %c0_i32_0 = arith.constant 0 : i32
    %c0_i32_1 = arith.constant 0 : i32
    return %c0_i32, %c0_i32_0 : i32, i32
  }
  func.func @transform_3(%arg0: i32) -> (i32, i32) {
    %c0_i32 = arith.constant 0 : i32
    %c0_i32_0 = arith.constant 0 : i32
    %c0_i32_1 = arith.constant 0 : i32
    return %c0_i32, %c0_i32_0 : i32, i32
  }
  func.func @transform_4(%arg0: i32) -> (i32, i32) {
    %c0_i32 = arith.constant 0 : i32
    %c0_i32_0 = arith.constant 0 : i32
    %c0_i32_1 = arith.constant 0 : i32
    return %c0_i32, %c0_i32_0 : i32, i32
  }
  func.func @transform_5(%arg0: i32) -> (i32, i32) {
    %c0_i32 = arith.constant 0 : i32
    %c0_i32_0 = arith.constant 0 : i32
    %c0_i32_1 = arith.constant 0 : i32
    return %c0_i32, %c0_i32_0 : i32, i32
  }
  func.func @transform_6(%arg0: i32) -> (i32, i32) {
    %c0_i32 = arith.constant 0 : i32
    %c0_i32_0 = arith.constant 0 : i32
    %c0_i32_1 = arith.constant 0 : i32
    return %c0_i32, %c0_i32_0 : i32, i32
  }
  func.func @transform_7(%arg0: i32) -> (i32, i32) {
    %c0_i32 = arith.constant 0 : i32
    %c0_i32_0 = arith.constant 0 : i32
    %c0_i32_1 = arith.constant 0 : i32
    return %c0_i32, %c0_i32_0 : i32, i32
  }
  func.func @transform_8(%arg0: i32) -> (i32, i32) {
    %c0_i32 = arith.constant 0 : i32
    %c0_i32_0 = arith.constant 0 : i32
    return %arg0, %c0_i32 : i32, i32
  }
  func.func @transform_9(%arg0: i32) -> (i32, i32) {
    %c0_i32 = arith.constant 0 : i32
    %c0_i32_0 = arith.constant 0 : i32
    return %arg0, %c0_i32 : i32, i32
  }
}

</mosaic_0001>

<bundles_post_ra>
// kernel: tpu_custom_call.1
= control target key start
LH: loop header
LB: loop body
LE: loop exit
PB: predicated region body
PF: predicated region fallthrough
CT: control target
= control target key end

     0   :  { %15 = vsyncpa [#allocation3], 0  ;;  %s889_s0 = inlined_call_operand.hbm [shape: f32[8,10], index: 0, kind: input, shape index: {}]   ;;  %s890_s1 = inlined_call_operand.hbm [shape: f32[8,10], index: 1, kind: input, shape index: {}]   ;;  %s891_s2 = inlined_call_operand.hbm [shape: f32[10,10], index: 2, kind: input, shape index: {}]   ;;  %s892_s3 = inlined_call_operand.hbm [shape: f32[10,10], index: 3, kind: input, shape index: {}]   ;;  %s893_s4 = inlined_call_operand.hbm [shape: f32[10,10], index: 4, kind: input, shape index: {}]   ;;  %s894_s5 = inlined_call_operand.vmem [shape: f32[10,10], index: 5, kind: input, shape index: {}]   ;;  %s895_s6 = inlined_call_operand.vmem [shape: f32[1,10], index: 6, kind: input, shape index: {}]   ;;  %s896_s7 = inlined_call_operand.vmem [shape: f32[1,10], index: 7, kind: input, shape index: {}]   ;;  %s897_s8 = inlined_call_operand.hbm [shape: f32[8,10], index: 8, kind: output, shape index: {0}]   ;;  %s898_s9 = inlined_call_operand.hbm [shape: f32[8,10], index: 9, kind: output, shape index: {1}]  }
   0x1   :  { %16 = vsyncpa [#allocation6], 0 }
   0x2   :  { %17 = vsyncpa [#allocation9], 0 }
   0x3   :  { %18 = vsyncpa [#allocation4], 0 }
   0x4   :  { %19 = vsyncpa [#allocation13], 0  ;;  %s699_s30 = smov [#allocation5]   ;;  %s535_s13 = scalar_lea.hbm %s890_s1, 128 }
   0x5   :  { %s36_s10 = sshll.u32 %s699_s30, 4  ;;  %p536_p0 = scmp.ne.s32.totalorder %s890_s1, %s535_s13  ;;  %s37_s10 = int_to_ptr.vmem [resolvable:$true] %s36_s10 }
   0x6   :  { %p539_p1 = scmp.lt.u32.totalorder %s535_s13, %s890_s1 }
   0x8   :  { %p541_p2 = pnand %p539_p1, %p536_p0 }
   0xa   :  { %544 = shalt.err (!%p541_p2)
}
   0xb   :  { %s545_s18 = scalar_lea.vmem %s37_s10, 128  ;;  %p550_p4 = scmp.lt.s32.totalorder %s37_s10, %s37_s10 }
   0xc   :  { %p546_p3 = scmp.ne.s32.totalorder %s37_s10, %s545_s18  ;;  %p551_p5 = scmp.lt.s32.totalorder %s545_s18, %s545_s18 }
   0xe   :  { %p552_p6 = por %p551_p5, %p550_p4 }
  0x10   :  { %p553_p7 = pnand %p552_p6, %p546_p3 }
  0x12   :  { %556 = shalt.err (!%p553_p7)
}
  0x13   :  { %39 = dma.hbm_to_vmem [thread:$0]  %s890_s1, 128, %s37_s10, [#allocation6]  }
  0x14   :  { %s700_s21 = smov [#allocation8]   ;;  %s701_s23 = smov [#allocation2]  }
  0x15   :  { %s57_s22 = sshll.u32 %s700_s21, 4  ;;  %s26_s24 = sshll.u32 %s701_s23, 4  ;;  %s58_s22 = int_to_ptr.vmem [resolvable:$true] %s57_s22  ;;  %s27_s24 = int_to_ptr.vmem [resolvable:$true] %s26_s24 }
  0x16   :  { %s557_s27 = scalar_lea.hbm %s892_s3, 256 }
  0x17   :  { %p558_p8 = scmp.ne.s32.totalorder %s892_s3, %s557_s27  ;;  %p561_p9 = scmp.lt.u32.totalorder %s557_s27, %s892_s3 }
  0x19   :  { %p563_p10 = pnand %p561_p9, %p558_p8 }
  0x1b   :  { %566 = shalt.err (!%p563_p10)
}
  0x1c   :  { %s567_s1 = scalar_lea.vmem %s58_s22, 256  ;;  %p572_p12 = scmp.lt.s32.totalorder %s58_s22, %s58_s22 }
  0x1d   :  { %p568_p11 = scmp.ne.s32.totalorder %s58_s22, %s567_s1  ;;  %p573_p13 = scmp.lt.s32.totalorder %s567_s1, %s567_s1 }
  0x1f   :  { %p574_p0 = por %p573_p13, %p572_p12 }
  0x21   :  { %p575_p1 = pnand %p574_p0, %p568_p11 }
  0x23   :  { %578 = shalt.err (!%p575_p1)
}
  0x24   :  { %s702_s10 = smov 128   ;;  %s703_s12 = smov 8  }
  0x25   :  { %63 = dma.hbm_to_vmem [thread:$0]  %s892_s3, 256, %s58_s22, [#allocation9], %s702_s10, %s702_s10, %s703_s12  }
  0x26   :  { %s579_s17 = scalar_lea.hbm %s889_s0, 128 }
  0x27   :  { %p580_p2 = scmp.ne.s32.totalorder %s889_s0, %s579_s17  ;;  %p583_p3 = scmp.lt.u32.totalorder %s579_s17, %s889_s0 }
  0x29   :  { %p585_p4 = pnand %p583_p3, %p580_p2 }
  0x2b   :  { %588 = shalt.err (!%p585_p4)
}
  0x2c   :  { %s589_s23 = scalar_lea.vmem %s27_s24, 128  ;;  %p594_p6 = scmp.lt.s32.totalorder %s27_s24, %s27_s24 }
  0x2d   :  { %p590_p5 = scmp.ne.s32.totalorder %s27_s24, %s589_s23  ;;  %p595_p7 = scmp.lt.s32.totalorder %s589_s23, %s589_s23 }
  0x2f   :  { %p596_p8 = por %p595_p7, %p594_p6 }
  0x31   :  { %p597_p9 = pnand %p596_p8, %p590_p5 }
  0x33   :  { %600 = shalt.err (!%p597_p9)
}
  0x34   :  { %29 = dma.hbm_to_vmem [thread:$0]  %s889_s0, 128, %s27_s24, [#allocation3]  }
  0x35   :  { %s704_s25 = smov [#allocation7]   ;;  %s705_s27 = smov [#allocation10]  }
  0x36   :  { %s45_s26 = sshll.u32 %s704_s25, 4  ;;  %s69_s28 = sshll.u32 %s705_s27, 4  ;;  %s46_s26 = int_to_ptr.vmem [resolvable:$true] %s45_s26  ;;  %s70_s28 = int_to_ptr.vmem [resolvable:$true] %s69_s28 }
  0x37   :  { %s601_s11 = scalar_lea.hbm %s891_s2, 256 }
  0x38   :  { %p602_p10 = scmp.ne.s32.totalorder %s891_s2, %s601_s11  ;;  %p605_p11 = scmp.lt.u32.totalorder %s601_s11, %s891_s2 }
  0x3a   :  { %p607_p12 = pnand %p605_p11, %p602_p10 }
  0x3c   :  { %610 = shalt.err (!%p607_p12)
}
  0x3d   :  { %s611_s0 = scalar_lea.vmem %s46_s26, 256  ;;  %p616_p0 = scmp.lt.s32.totalorder %s46_s26, %s46_s26 }
  0x3e   :  { %p612_p13 = scmp.ne.s32.totalorder %s46_s26, %s611_s0  ;;  %p617_p1 = scmp.lt.s32.totalorder %s611_s0, %s611_s0 }
  0x40   :  { %p618_p2 = por %p617_p1, %p616_p0 }
  0x42   :  { %p619_p3 = pnand %p618_p2, %p612_p13 }
  0x44   :  { %622 = shalt.err (!%p619_p3)
}
  0x45   :  { %51 = dma.hbm_to_vmem [thread:$0]  %s891_s2, 256, %s46_s26, [#allocation6], %s702_s10, %s702_s10, %s703_s12  }
  0x46   :  { %s623_s19 = scalar_lea.hbm %s893_s4, 256 }
  0x47   :  { %p624_p4 = scmp.ne.s32.totalorder %s893_s4, %s623_s19  ;;  %p627_p5 = scmp.lt.u32.totalorder %s623_s19, %s893_s4 }
  0x49   :  { %p629_p6 = pnand %p627_p5, %p624_p4 }
  0x4b   :  { %632 = shalt.err (!%p629_p6)
}
  0x4c   :  { %s633_s22 = scalar_lea.vmem %s70_s28, 256  ;;  %p638_p8 = scmp.lt.s32.totalorder %s70_s28, %s70_s28 }
  0x4d   :  { %p634_p7 = scmp.ne.s32.totalorder %s70_s28, %s633_s22  ;;  %p639_p9 = scmp.lt.s32.totalorder %s633_s22, %s633_s22 }
  0x4f   :  { %p640_p10 = por %p639_p9, %p638_p8 }
  0x51   :  { %p641_p11 = pnand %p640_p10, %p634_p7 }
  0x53   :  { %644 = shalt.err (!%p641_p11)
}
  0x54   :  { %75 = dma.hbm_to_vmem [thread:$0]  %s893_s4, 256, %s70_s28, [#allocation9], %s702_s10, %s702_s10, %s703_s12  }
  0x55   :  { %689 = dma.done.wait [#allocation3], 128  }
  0x56   :  { %690 = vsyncadd [#allocation3], 4294967168 }
  0x57   :  { %691 = dma.done.wait [#allocation6], 384  }
  0x58   :  { %692 = vsyncadd [#allocation6], 4294966912 }
  0x59   :  { %693 = dma.done.wait [#allocation9], 512  }
  0x5a   :  { %694 = vsyncadd [#allocation9], 4294966784  ;;  %v706_v0 = vmov 0.0|0.0   ;;  %vm707_vm0 = vmmov 0   ;;  %v708_v1 = vmov 0.0   ;;  %vm107_vm1 = vcmask 1041408  }
  0x5b   :  { %506 = vmatprep.subr.bf16.mxu0 %v706_v0  ;;  %510 = vmatprep.subr.bf16.mxu1 %v706_v0  ;;  %vm709_vm2 = vmmov 1   ;;  %v101_v3 = vld [vmem:[#allocation8] sm:$0xff]  ;;  %v102_v4 = vld [vmem:[#allocation8 + $0x8] sm:$0x3]  ;;  %v99_v5 = vld [vmem:[#allocation7] sm:$0xff]  ;;  %vm103_vm4 = vcmask 80896  }
  0x5c   :  { %482 = vmatprep.mubr.msk.f32.mxu0 %vm707_vm0, %v708_v1  ;;  %489 = vmatprep.mubr.msk.f32.mxu1 %vm707_vm0, %v708_v1  ;;  %vm833_vm3 = vmpackc.low %vm107_vm1, %vm709_vm2  ;;  %v507_v6 = vpack.c.bf16 %v102_v4, %v101_v3  ;;  %v100_v7 = vld [vmem:[#allocation7 + $0x8] sm:$0x3]  ;;  %v268_v9 = vld [vmem:[%s894_s5] sm:$0xff]  ;;  %s710_s28 = smov [#allocation11]   ;;  %s711_s1 = smov [#allocation12]  }
  0x5d   :  { %v511_v8 = vpack.c.bf16 %v100_v7, %v99_v5  ;;  %v269_v10 = vld [vmem:[%s894_s5 + $0x8] sm:$0x3]  ;;  %v266_v11 = vld [vmem:[#allocation10] sm:$0xff]  ;;  %v98_v12 = vld [vmem:[#allocation5] sm:$0xff]  ;;  %s431_s29 = sshll.u32 %s710_s28, 4  ;;  %s441_s13 = sshll.u32 %s711_s1, 4  ;;  %s432_s29 = int_to_ptr.vmem [resolvable:$true] %s431_s29  ;;  %s442_s13 = int_to_ptr.vmem [resolvable:$true] %s441_s13 }
  0x5e   :  { %509 = vmatpush3.bf16.msk.msra.mxu0 %vm833_vm3, %v507_v6  ;;  %v515_v13 = vpack.c.bf16 %v269_v10, %v268_v9  ;;  %v267_v14 = vld [vmem:[#allocation10 + $0x8] sm:$0x3]  ;;  %v97_v15 = vld [vmem:[#allocation2] sm:$0xff]  ;;  %v460_v19 = vld [vmem:[%s895_s6] ss:$0 sm:$0xff]  ;;  %s645_s6 = scalar_lea.vmem %s432_s29, 128  ;;  %p650_p13 = scmp.lt.s32.totalorder %s432_s29, %s432_s29 }
  0x5f   :  { %513 = vmatpush3.bf16.msk.msra.mxu1 %vm833_vm3, %v511_v8  ;;  %514 = vmatprep.subr.bf16.mxu0 %v706_v0  ;;  %v519_v16 = vpack.c.bf16 %v267_v14, %v266_v11  ;;  %v465_v26 = vld [vmem:[%s896_s7] ss:$0 sm:$0xff]  ;;  %p646_p12 = scmp.ne.s32.totalorder %s432_s29, %s645_s6  ;;  %p651_p0 = scmp.lt.s32.totalorder %s645_s6, %s645_s6 }
  0x60   :  { %518 = vmatprep.subr.bf16.mxu1 %v706_v0 }
  0x61   :  { %483 = vmatmul.mubr.msk.f32.vlgmr.msra.gmra.mrb[0].mxu0 %vm103_vm4, %v98_v12  ;;  %p652_p1 = por %p651_p0, %p650_p13 }
  0x62   :  { %490 = vmatmul.mubr.msk.f32.vlgmr.msra.gmra.mrb[0].mxu1 %vm103_vm4, %v97_v15  ;;  %517 = vmatpush3.bf16.msk.msra.mxu0 %vm833_vm3, %v515_v13 }
  0x63   :  { %521 = vmatpush3.bf16.msk.msra.mxu1 %vm833_vm3, %v519_v16  ;;  %496 = vmatprep.mubr.msk.f32.mxu0 %vm707_vm0, %v708_v1  ;;  %p653_p2 = pnand %p652_p1, %p646_p12 }
  0x64   :  { %503 = vmatprep.mubr.msk.f32.mxu1 %vm707_vm0, %v708_v1 }
  0x65   :  { %497 = vmatmul.mubr.msk.f32.vlgmr.msra.gmra.mrb[2].mxu0 %vm103_vm4, %v98_v12 }
  0x66   :  { %504 = vmatmul.mubr.msk.f32.vlgmr.msra.gmra.mrb[2].mxu1 %vm103_vm4, %v97_v15 }
 0x134   :  { %v177_v17 = vpop.f32.mrb[0].mxu0 }
 0x135   :  { %v253_v18 = vpop.f32.mrb[0].mxu1  ;;  %v484_v20 = vpop.f32.mrb[1].mxu0 }
 0x136   :  { %v254_v21 = vadd.f32 %v253_v18, %v177_v17  ;;  %v491_v22 = vpop.f32.mrb[1].mxu1 }
 0x138   :  { %v264_v23 = vadd.f32 %v460_v19, %v254_v21  ;;  %v339_v24 = vpop.f32.mrb[2].mxu0 }
 0x139   :  { %v412_v25 = vpop.f32.mrb[2].mxu1  ;;  %v498_v27 = vpop.f32.mrb[3].mxu0 }
 0x13a   :  { %265 = vst.msk [vmem:[#allocation11] sm:$0xff] %vm103_vm4, %v264_v23  ;;  %v413_v28 = vadd.f32 %v412_v25, %v339_v24  ;;  %v505_v29 = vpop.f32.mrb[3].mxu1 }
 0x13b   :  { %656 = shalt.err (!%p653_p2)
}
 0x13c   :  { %s657_s0 = scalar_lea.hbm %s897_s8, 128 }
 0x13d   :  { %p658_p3 = scmp.ne.s32.totalorder %s897_s8, %s657_s0  ;;  %p661_p4 = scmp.lt.u32.totalorder %s657_s0, %s897_s8 }
 0x13f   :  { %p663_p5 = pnand %p661_p4, %p658_p3 }
 0x141   :  { %666 = shalt.err (!%p663_p5)
}
 0x142   :  { %434 = dma.vmem_to_hbm [thread:$0]  %s432_s29, 128, %s897_s8, [#allocation4]   ;;  %v423_v30 = vadd.f32 %v465_v26, %v413_v28 }
 0x143   :  { %s667_s20 = scalar_lea.vmem %s442_s13, 128  ;;  %p672_p7 = scmp.lt.s32.totalorder %s442_s13, %s442_s13 }
 0x144   :  { %424 = vst.msk [vmem:[#allocation12] sm:$0xff] %vm103_vm4, %v423_v30  ;;  %p668_p6 = scmp.ne.s32.totalorder %s442_s13, %s667_s20  ;;  %p673_p8 = scmp.lt.s32.totalorder %s667_s20, %s667_s20 }
 0x146   :  { %p674_p9 = por %p673_p8, %p672_p7 }
 0x148   :  { %p675_p10 = pnand %p674_p9, %p668_p6 }
 0x14a   :  { %678 = shalt.err (!%p675_p10)
}
 0x14b   :  { %s679_s3 = scalar_lea.hbm %s898_s9, 128 }
 0x14c   :  { %p680_p11 = scmp.ne.s32.totalorder %s898_s9, %s679_s3  ;;  %p683_p12 = scmp.lt.u32.totalorder %s679_s3, %s898_s9 }
 0x14e   :  { %p685_p13 = pnand %p683_p12, %p680_p11 }
 0x150   :  { %688 = shalt.err (!%p685_p13)
}
 0x151   :  { %444 = dma.vmem_to_hbm [thread:$0]  %s442_s13, 128, %s898_s9, [#allocation13]  }
 0x152   :  { %695 = dma.done.wait [#allocation4], 128  }
 0x153   :  { %696 = vsyncadd [#allocation4], 4294967168 }
 0x154   :  { %697 = dma.done.wait [#allocation13], 128  }
 0x155   :  { %698 = vsyncadd [#allocation13], 4294967168 }
 0x156   :  { %451 = vsyncpa [#allocation3], 1 }
 0x157   :  { %452 = vsyncpa [#allocation6], 1 }
 0x158   :  { %453 = vsyncpa [#allocation9], 1 }
 0x159   :  { %454 = vsyncpa [#allocation4], 1 }
 0x15a   :  { %455 = vsyncpa [#allocation13], 1 }

</bundles_post_ra>
